<compile_context>
chip_gen: v7x
topology: tpu7x:2x2x1
jax: 0.10.0
libtpu: 0.0.40
codegen_flags: <defaults>
</compile_context>

<pallas_src>
import functools

import jax
import jax.numpy as jnp
from jax.experimental import pallas as pl
from jax.experimental.pallas import tpu as pltpu


# -------------------- in-script "config" (stand-in for the external `config`) -------------
class _Config:
    NUM_OUTPUTS = 2                 # HRNet-style: two prediction heads
    BALANCE_WEIGHTS = (0.4, 1.0)    # per-head loss weights
    SB_WEIGHTS = 1.0                # single-branch weight (used when len(score)==1)


config = _Config()
IGNORE_LABEL = -1
# weight=None in nn.CrossEntropyLoss -> no per-class weighting, no learnable params.


def _round_up(x, m):
    return ((x + m - 1) // m) * m


# -------------------- generation-aware tile / VMEM sizing --------------------------------
def _vmem_budget_bytes():
    """Live-VMEM budget for one grid step.

    Conservative fallback that is safe on every generation (v7x has only 64 MiB of
    physical VMEM and a 32 MiB scoped default); when the chip can be queried,
    v5e/v6e (128 MiB VMEM) are allowed much larger lane-dense tiles.
    """
    budget = 36 << 20
    try:
        cap = getattr(pltpu.get_tpu_info(), "vmem_capacity_bytes", None)
        if cap:
            budget = min(max(int(cap) * 3 // 8, 24 << 20), 80 << 20)
    except Exception:
        pass
    return budget


def _pick_tile_and_vmem(hw, c, num_heads, itemsize, tile_hw):
    # Rough per-pixel live bytes: double-buffered logit blocks (NH * 2 * C * itemsize),
    # f32 elementwise temporaries (~6 * C * 4 per head), target block + slack.
    per_pix = num_heads * c * (2 * itemsize + 24) + 16
    budget = _vmem_budget_bytes()
    if tile_hw is None:
        tile = min(65536, max(128, budget // per_pix))
    else:
        tile = max(128, int(tile_hw))
    tile = (tile // 128) * 128
    tile = min(tile, _round_up(hw, 128))
    vmem_limit = int(min(max(per_pix * tile + (4 << 20), 32 << 20), 100 << 20))
    return int(tile), vmem_limit


# -------------------- Pallas kernel ------------------------------------------------------
def _make_ce_kernel(num_heads, ignore_label, hw, tile_hw):
    ragged = (hw % tile_hw) != 0   # static: skip bounds mask entirely on full grids

    def ce_kernel(*refs):
        score_refs = refs[:num_heads]                         # each (1, C, T)
        target_ref = refs[num_heads]                          # (1, 1, T)
        sum_refs = refs[num_heads + 1: 2 * num_heads + 1]     # each (1, 1, 1, 128)
        cnt_ref = refs[2 * num_heads + 1]                     # (1, 1, 1, 128)

        tgt = target_ref[0]                                   # (1, T) int32

        # validity: not ignore_label (AND in-bounds only if the last tile is ragged)
        valid = tgt != ignore_label
        if ragged:
            j = pl.program_id(1)
            pix = j * tile_hw + jax.lax.broadcasted_iota(jnp.int32, tgt.shape, 1)
            valid = valid & (pix < hw)

        cnt = jnp.sum(valid.astype(jnp.float32))
        cnt_ref[...] = jnp.full(cnt_ref.shape, cnt, dtype=jnp.float32)

        for h in range(num_heads):                            # static unroll over heads
            logits = score_refs[h][0].astype(jnp.float32)     # (C, T) classes on sublanes

            # numerically stable log-sum-exp over the class (sublane) axis
            m = jnp.max(logits, axis=0, keepdims=True)                              # (1, T)
            lse = m + jnp.log(jnp.sum(jnp.exp(logits - m), axis=0, keepdims=True))  # (1, T)

            # gather logit at target class: select + sublane reduce (no one-hot mul)
            class_ids = jax.lax.broadcasted_iota(jnp.int32, (logits.shape[0], 1), 0)
            tgt_logit = jnp.sum(jnp.where(class_ids == tgt, logits, 0.0),
                                axis=0, keepdims=True)                              # (1, T)

            ce = jnp.where(valid, lse - tgt_logit, 0.0)                             # (1, T)
            sum_refs[h][...] = jnp.full(sum_refs[h].shape, jnp.sum(ce),
                                        dtype=jnp.float32)

    return ce_kernel


@functools.partial(jax.jit,
                   static_argnames=("weights", "ignore_label", "tile", "vmem_limit"))
def _fused_ce_impl(scores, target, *, weights, ignore_label, tile, vmem_limit):
    num_heads = len(scores)
    N, C, H, W = scores[0].shape
    HW = H * W

    # Reshape only (no transpose, no pad): keeps HBM traffic at one read per score elem.
    xs = [s.reshape(N, C, HW) for s in scores]                 # (N, C, HW) each
    t = target.reshape(N, 1, HW).astype(jnp.int32)             # (N, 1, HW)

    num_tiles = -(-HW // tile)
    grid = (N, num_tiles)

    score_spec = pl.BlockSpec((1, C, tile), lambda n, j: (n, 0, j))
    target_spec = pl.BlockSpec((1, 1, tile), lambda n, j: (n, 0, j))
    part_spec = pl.BlockSpec((1, 1, 1, 128), lambda n, j: (n, j, 0, 0))
    part_shape = jax.ShapeDtypeStruct((N, num_tiles, 1, 128), jnp.float32)

    outs = pl.pallas_call(
        _make_ce_kernel(num_heads, ignore_label, HW, tile),
        out_shape=tuple([part_shape] * num_heads + [part_shape]),
        grid_spec=pltpu.PrefetchScalarGridSpec(
            num_scalar_prefetch=0,
            grid=grid,
            in_specs=[score_spec] * num_heads + [target_spec],
            out_specs=[part_spec] * num_heads + [part_spec],
        ),
        compiler_params=pltpu.CompilerParams(
            dimension_semantics=("parallel", "parallel"),
            vmem_limit_bytes=vmem_limit,
        ),
    )(*xs, t)

    sums, cnts = outs[:num_heads], outs[num_heads]
    head_sums = jnp.stack([jnp.sum(s[:, :, 0, 0]) for s in sums])   # (NH,)
    count = jnp.sum(cnts[:, :, 0, 0])                               # scalar
    w = jnp.asarray(weights, dtype=jnp.float32)
    # per-head mean = head_sum / count (count identical across heads: shared target)
    return jnp.dot(w, head_sums) / count


def cross_entropy_fused(scores, target, weights, *, ignore_label=IGNORE_LABEL,
                        tile_hw=None):
    """sum_h weights[h] * nn.CrossEntropyLoss(ignore_index)(scores[h], target)."""
    scores = tuple(scores)
    N, C, H, W = scores[0].shape
    itemsize = jnp.dtype(scores[0].dtype).itemsize
    tile, vmem_limit = _pick_tile_and_vmem(H * W, C, len(scores), itemsize, tile_hw)
    return _fused_ce_impl(scores, target, weights=tuple(float(w) for w in weights),
                          ignore_label=int(ignore_label), tile=tile,
                          vmem_limit=vmem_limit)


def cross_entropy_2d(score, target, *, ignore_label=IGNORE_LABEL, tile_hw=None):
    """Single-head nn.CrossEntropyLoss(weight=None, ignore_index=ignore_label)."""
    return cross_entropy_fused((score,), target, (1.0,), ignore_label=ignore_label,
                               tile_hw=tile_hw)


# -------------------- module-level forward (mirrors CrossEntropy.forward) ----------------
def cross_entropy_forward(score, target):
    if config.NUM_OUTPUTS == 1:
        score = [score]
    if not isinstance(score, (list, tuple)):
        score = [score]
    balance_weights = config.BALANCE_WEIGHTS
    sb_weights = config.SB_WEIGHTS

    if len(balance_weights) == len(score):
        weights = tuple(float(w) for w in balance_weights)
    elif len(score) == 1:
        weights = (float(sb_weights),)
    else:
        raise ValueError("lengths of prediction and target are not identical!")

    # Fuse all heads into ONE pallas_call when shapes/dtypes match (single launch,
    # single HBM read of `target`); otherwise fall back to one call per head.
    if len({(s.shape, str(s.dtype)) for s in score}) == 1:
        return cross_entropy_fused(score, target, weights)
    return sum(w * cross_entropy_fused((s,), target, (1.0,))
               for w, s in zip(weights, score))


# -------------------- pure-JAX reference for sanity checking -----------------------------
def _ref_ce(score, target, ignore=IGNORE_LABEL):
    N, C, H, W = score.shape
    x = jnp.transpose(score, (0, 2, 3, 1)).reshape(-1, C).astype(jnp.float32)
    t = target.reshape(-1)
    valid = t != ignore
    lse = jax.scipy.special.logsumexp(x, axis=-1)
    safe_t = jnp.where(valid, t, 0)
    tl = jnp.take_along_axis(x, safe_t[:, None], axis=-1)[:, 0]
    ce = jnp.where(valid, lse - tl, 0.0)
    return jnp.sum(ce) / jnp.sum(valid)


if __name__ == "__main__":
    key = jax.random.PRNGKey(0)
    k1, k2, k3, k4 = jax.random.split(key, 4)

    N, C, H, W = 2, 4, 16, 16  # small shapes consistent with NCHW segmentation logits

    score0 = jax.random.normal(k1, (N, C, H, W), dtype=jnp.float32)
    score1 = jax.random.normal(k2, (N, C, H, W), dtype=jnp.float32)
    target = jax.random.randint(k3, (N, H, W), 0, C, dtype=jnp.int32)
    # sprinkle some ignore_label pixels
    ignore_mask = jax.random.uniform(k4, (N, H, W)) < 0.1
    target = jnp.where(ignore_mask, IGNORE_LABEL, target)

    scores = [score0, score1]  # NUM_OUTPUTS == 2 -> list of heads, like HRNet

    loss = cross_entropy_forward(scores, target)
    loss = jax.block_until_ready(loss)

    ref = sum(w * _ref_ce(s, target) for w, s in zip(config.BALANCE_WEIGHTS, scores))
    assert jnp.allclose(loss, ref, rtol=1e-5, atol=1e-5), (loss, ref)

    # bf16 logits path (halves HBM traffic on v5e/v6e); compare against the same
    # bf16-quantized values run through the f32 reference.
    scores_bf16 = [s.astype(jnp.bfloat16) for s in scores]
    loss_bf16 = jax.block_until_ready(cross_entropy_forward(scores_bf16, target))
    ref_bf16 = sum(w * _ref_ce(s.astype(jnp.float32), target)
                   for w, s in zip(config.BALANCE_WEIGHTS, scores_bf16))
    assert jnp.allclose(loss_bf16, ref_bf16, rtol=2e-3, atol=2e-3), (loss_bf16, ref_bf16)

    print("KERNEL_OK")
</pallas_src>

<mosaic_0001>
module attributes {stable_mosaic.version = 11 : i64} {
  func.func @ce_kernel(%arg0: i32, %arg1: i32, %arg2: memref<1x4x256xf32, #tpu.memory_space<vmem>>, %arg3: memref<1x4x256xf32, #tpu.memory_space<vmem>>, %arg4: memref<1x1x256xi32, #tpu.memory_space<vmem>>, %arg5: memref<1x1x1x128xf32, #tpu.memory_space<vmem>>, %arg6: memref<1x1x1x128xf32, #tpu.memory_space<vmem>>, %arg7: memref<1x1x1x128xf32, #tpu.memory_space<vmem>>) attributes {dimension_semantics = [#tpu.dimension_semantics<parallel>, #tpu.dimension_semantics<parallel>], iteration_bounds = array<i64: 2, 1>, scalar_prefetch = 0 : i64, scratch_operands = 0 : i64, tpu.core_type = #tpu.core_type<tc>, window_params = [{transform_indices = @transform_0, window_bounds = array<i64: 1, 4, 256>}, {transform_indices = @transform_1, window_bounds = array<i64: 1, 4, 256>}, {transform_indices = @transform_2, window_bounds = array<i64: 1, 1, 256>}, {transform_indices = @transform_3, window_bounds = array<i64: 1, 1, 1, 128>}, {transform_indices = @transform_4, window_bounds = array<i64: 1, 1, 1, 128>}, {transform_indices = @transform_5, window_bounds = array<i64: 1, 1, 1, 128>}]} {
    %c0 = arith.constant 0 : index
    %c0_0 = arith.constant 0 : index
    %c0_1 = arith.constant 0 : index
    %0 = vector.load %arg4[%c0, %c0_0, %c0_1] : memref<1x1x256xi32, #tpu.memory_space<vmem>>, vector<1x1x256xi32>
    %1 = vector.shape_cast %0 : vector<1x1x256xi32> to vector<1x256xi32>
    %c-1_i32 = arith.constant -1 : i32
    %2 = vector.broadcast %c-1_i32 : i32 to vector<1x256xi32>
    %3 = arith.cmpi ne, %1, %2 : vector<1x256xi32>
    %4 = arith.extui %3 : vector<1x256xi1> to vector<1x256xi32>
    %5 = arith.sitofp %4 : vector<1x256xi32> to vector<1x256xf32>
    %6 = vector.shape_cast %5 : vector<1x256xf32> to vector<1x1x256xf32>
    %cst = arith.constant dense<0.000000e+00> : vector<1xf32>
    %7 = vector.multi_reduction <add>, %6, %cst [1, 2] : vector<1x1x256xf32> to vector<1xf32>
    %8 = vector.shape_cast %7 : vector<1xf32> to vector<1x1x1xf32>
    %9 = vector.extract %8[0, 0, 0] : f32 from vector<1x1x1xf32>
    %10 = vector.broadcast %9 : f32 to vector<1x1x1x128xf32>
    %c0_2 = arith.constant 0 : index
    %c0_3 = arith.constant 0 : index
    %c0_4 = arith.constant 0 : index
    %c0_5 = arith.constant 0 : index
    %11 = vector.load %arg7[%c0_2, %c0_3, %c0_4, %c0_5] : memref<1x1x1x128xf32, #tpu.memory_space<vmem>>, vector<1x1x1x128xf32>
    tpu.vector_store %arg7[%c0_2, %c0_3, %c0_4, %c0_5], %10 {strides = array<i32>} : memref<1x1x1x128xf32, #tpu.memory_space<vmem>>, vector<1x1x1x128xf32>,
    %c0_6 = arith.constant 0 : index
    %c0_7 = arith.constant 0 : index
    %c0_8 = arith.constant 0 : index
    %12 = vector.load %arg2[%c0_6, %c0_7, %c0_8] : memref<1x4x256xf32, #tpu.memory_space<vmem>>, vector<1x4x256xf32>
    %13 = vector.shape_cast %12 : vector<1x4x256xf32> to vector<4x256xf32>
    %cst_9 = arith.constant dense<0xFF800000> : vector<256xf32>
    %14 = vector.multi_reduction <maximumf>, %13, %cst_9 [0] : vector<4x256xf32> to vector<256xf32>
    %15 = vector.shape_cast %14 : vector<256xf32> to vector<1x256xf32>
    %16 = vector.broadcast %15 : vector<1x256xf32> to vector<4x256xf32>
    %17 = arith.subf %13, %16 : vector<4x256xf32>
    %18 = math.exp %17 : vector<4x256xf32>
    %cst_10 = arith.constant dense<0.000000e+00> : vector<256xf32>
    %19 = vector.multi_reduction <add>, %18, %cst_10 [0] : vector<4x256xf32> to vector<256xf32>
    %20 = vector.shape_cast %19 : vector<256xf32> to vector<1x256xf32>
    %21 = math.log %20 : vector<1x256xf32>
    %22 = arith.addf %15, %21 : vector<1x256xf32>
    %23 = tpu.iota {dimensions = array<i32: 0>} : vector<4x1xi32>
    %24 = vector.broadcast %23 : vector<4x1xi32> to vector<4x256xi32>
    %25 = vector.broadcast %1 : vector<1x256xi32> to vector<4x256xi32>
    %26 = arith.cmpi eq, %24, %25 : vector<4x256xi32>
    %cst_11 = arith.constant 0.000000e+00 : f32
    %27 = vector.broadcast %cst_11 : f32 to vector<4x256xf32>
    %28 = arith.select %26, %13, %27 : vector<4x256xi1>, vector<4x256xf32>
    %cst_12 = arith.constant dense<0.000000e+00> : vector<256xf32>
    %29 = vector.multi_reduction <add>, %28, %cst_12 [0] : vector<4x256xf32> to vector<256xf32>
    %30 = vector.shape_cast %29 : vector<256xf32> to vector<1x256xf32>
    %31 = arith.subf %22, %30 : vector<1x256xf32>
    %cst_13 = arith.constant 0.000000e+00 : f32
    %32 = vector.broadcast %cst_13 : f32 to vector<1x256xf32>
    %33 = arith.select %3, %31, %32 : vector<1x256xi1>, vector<1x256xf32>
    %34 = vector.shape_cast %33 : vector<1x256xf32> to vector<1x1x256xf32>
    %cst_14 = arith.constant dense<0.000000e+00> : vector<1xf32>
    %35 = vector.multi_reduction <add>, %34, %cst_14 [1, 2] : vector<1x1x256xf32> to vector<1xf32>
    %36 = vector.shape_cast %35 : vector<1xf32> to vector<1x1x1xf32>
    %37 = vector.extract %36[0, 0, 0] : f32 from vector<1x1x1xf32>
    %38 = vector.broadcast %37 : f32 to vector<1x1x1x128xf32>
    %c0_15 = arith.constant 0 : index
    %c0_16 = arith.constant 0 : index
    %c0_17 = arith.constant 0 : index
    %c0_18 = arith.constant 0 : index
    %39 = vector.load %arg5[%c0_15, %c0_16, %c0_17, %c0_18] : memref<1x1x1x128xf32, #tpu.memory_space<vmem>>, vector<1x1x1x128xf32>
    tpu.vector_store %arg5[%c0_15, %c0_16, %c0_17, %c0_18], %38 {strides = array<i32>} : memref<1x1x1x128xf32, #tpu.memory_space<vmem>>, vector<1x1x1x128xf32>,
    %c0_19 = arith.constant 0 : index
    %c0_20 = arith.constant 0 : index
    %c0_21 = arith.constant 0 : index
    %40 = vector.load %arg3[%c0_19, %c0_20, %c0_21] : memref<1x4x256xf32, #tpu.memory_space<vmem>>, vector<1x4x256xf32>
    %41 = vector.shape_cast %40 : vector<1x4x256xf32> to vector<4x256xf32>
    %cst_22 = arith.constant dense<0xFF800000> : vector<256xf32>
    %42 = vector.multi_reduction <maximumf>, %41, %cst_22 [0] : vector<4x256xf32> to vector<256xf32>
    %43 = vector.shape_cast %42 : vector<256xf32> to vector<1x256xf32>
    %44 = vector.broadcast %43 : vector<1x256xf32> to vector<4x256xf32>
    %45 = arith.subf %41, %44 : vector<4x256xf32>
    %46 = math.exp %45 : vector<4x256xf32>
    %cst_23 = arith.constant dense<0.000000e+00> : vector<256xf32>
    %47 = vector.multi_reduction <add>, %46, %cst_23 [0] : vector<4x256xf32> to vector<256xf32>
    %48 = vector.shape_cast %47 : vector<256xf32> to vector<1x256xf32>
    %49 = math.log %48 : vector<1x256xf32>
    %50 = arith.addf %43, %49 : vector<1x256xf32>
    %51 = tpu.iota {dimensions = array<i32: 0>} : vector<4x1xi32>
    %52 = vector.broadcast %51 : vector<4x1xi32> to vector<4x256xi32>
    %53 = vector.broadcast %1 : vector<1x256xi32> to vector<4x256xi32>
    %54 = arith.cmpi eq, %52, %53 : vector<4x256xi32>
    %cst_24 = arith.constant 0.000000e+00 : f32
    %55 = vector.broadcast %cst_24 : f32 to vector<4x256xf32>
    %56 = arith.select %54, %41, %55 : vector<4x256xi1>, vector<4x256xf32>
    %cst_25 = arith.constant dense<0.000000e+00> : vector<256xf32>
    %57 = vector.multi_reduction <add>, %56, %cst_25 [0] : vector<4x256xf32> to vector<256xf32>
    %58 = vector.shape_cast %57 : vector<256xf32> to vector<1x256xf32>
    %59 = arith.subf %50, %58 : vector<1x256xf32>
    %cst_26 = arith.constant 0.000000e+00 : f32
    %60 = vector.broadcast %cst_26 : f32 to vector<1x256xf32>
    %61 = arith.select %3, %59, %60 : vector<1x256xi1>, vector<1x256xf32>
    %62 = vector.shape_cast %61 : vector<1x256xf32> to vector<1x1x256xf32>
    %cst_27 = arith.constant dense<0.000000e+00> : vector<1xf32>
    %63 = vector.multi_reduction <add>, %62, %cst_27 [1, 2] : vector<1x1x256xf32> to vector<1xf32>
    %64 = vector.shape_cast %63 : vector<1xf32> to vector<1x1x1xf32>
    %65 = vector.extract %64[0, 0, 0] : f32 from vector<1x1x1xf32>
    %66 = vector.broadcast %65 : f32 to vector<1x1x1x128xf32>
    %c0_28 = arith.constant 0 : index
    %c0_29 = arith.constant 0 : index
    %c0_30 = arith.constant 0 : index
    %c0_31 = arith.constant 0 : index
    %67 = vector.load %arg6[%c0_28, %c0_29, %c0_30, %c0_31] : memref<1x1x1x128xf32, #tpu.memory_space<vmem>>, vector<1x1x1x128xf32>
    tpu.vector_store %arg6[%c0_28, %c0_29, %c0_30, %c0_31], %66 {strides = array<i32>} : memref<1x1x1x128xf32, #tpu.memory_space<vmem>>, vector<1x1x1x128xf32>,
    return
  }
  func.func @transform_0(%arg0: i32, %arg1: i32) -> (i32, i32, i32) {
    %c0_i32 = arith.constant 0 : i32
    %c0_i32_0 = arith.constant 0 : i32
    return %arg0, %c0_i32, %arg1 : i32, i32, i32
  }
  func.func @transform_1(%arg0: i32, %arg1: i32) -> (i32, i32, i32) {
    %c0_i32 = arith.constant 0 : i32
    %c0_i32_0 = arith.constant 0 : i32
    return %arg0, %c0_i32, %arg1 : i32, i32, i32
  }
  func.func @transform_2(%arg0: i32, %arg1: i32) -> (i32, i32, i32) {
    %c0_i32 = arith.constant 0 : i32
    %c0_i32_0 = arith.constant 0 : i32
    return %arg0, %c0_i32, %arg1 : i32, i32, i32
  }
  func.func @transform_3(%arg0: i32, %arg1: i32) -> (i32, i32, i32, i32) {
    %c0_i32 = arith.constant 0 : i32
    %c0_i32_0 = arith.constant 0 : i32
    %c0_i32_1 = arith.constant 0 : i32
    return %arg0, %arg1, %c0_i32, %c0_i32_0 : i32, i32, i32, i32
  }
  func.func @transform_4(%arg0: i32, %arg1: i32) -> (i32, i32, i32, i32) {
    %c0_i32 = arith.constant 0 : i32
    %c0_i32_0 = arith.constant 0 : i32
    %c0_i32_1 = arith.constant 0 : i32
    return %arg0, %arg1, %c0_i32, %c0_i32_0 : i32, i32, i32, i32
  }
  func.func @transform_5(%arg0: i32, %arg1: i32) -> (i32, i32, i32, i32) {
    %c0_i32 = arith.constant 0 : i32
    %c0_i32_0 = arith.constant 0 : i32
    %c0_i32_1 = arith.constant 0 : i32
    return %arg0, %arg1, %c0_i32, %c0_i32_0 : i32, i32, i32, i32
  }
}

</mosaic_0001>

<bundles_post_ra>
// kernel: _fused_ce_impl.1
= control target key start
LH: loop header
LB: loop body
LE: loop exit
PB: predicated region body
PF: predicated region fallthrough
CT: control target
= control target key end

     0   :  { %s913_s18 = smov 0   ;;  %s915_s19 = smov 0   ;;  %s1052_s0 = inlined_call_operand.vmem [shape: f32[2,4,256], index: 0, kind: input, shape index: {}]   ;;  %s1053_s1 = inlined_call_operand.vmem [shape: f32[2,4,256], index: 1, kind: input, shape index: {}]   ;;  %s1054_s2 = inlined_call_operand.vmem [shape: s32[2,1,256], index: 2, kind: input, shape index: {}]   ;;  %s1055_s3 = inlined_call_operand.vmem [shape: f32[2,1,1,128], index: 3, kind: output, shape index: {0}]   ;;  %s1056_s4 = inlined_call_operand.vmem [shape: f32[2,1,1,128], index: 4, kind: output, shape index: {1}]   ;;  %s1057_s5 = inlined_call_operand.vmem [shape: f32[2,1,1,128], index: 5, kind: output, shape index: {2}]  }
   0x1   :  { %s917_s20 = smov 0  }
   0x2 LB: > { %s28_s21 = sadd.s32 1, %s875_s19  ;;  %p800_p0 = scmp.ge.s32.totalorder %s879_s20, 1  ;;  %s879_s20 = sphi %s917_s20, %s16_s20   ;;  %s875_s19 = sphi %s915_s19, %s1061_s19   ;;  %s871_s18 = sphi %s913_s18, %s1060_s18  }
   0x3   : > { %p30_p1 = scmp.ge.s32.totalorder %s28_s21, 2  ;;  %p250_p2 = scmp.lt.s32.totalorder %s879_s20, 3 }
   0x5   : > { %s1063_s21 = smov (%p30_p1, %s28_s21), 0  ;;  %p251_p3 = pnand %p800_p0, %p250_p2 }
   0x6   : > { %p313_p4 = scmp.lt.s32.totalorder (!%p251_p3), %s871_s18, 1  ;;  %v364_v0 = vlaneseq (!%p251_p3)  ;;  %vm393_vm0 = vcmask (!%p251_p3), 1043456   ;;  %v881_v8 = vmov (!%p251_p3), 0.0   ;;  %vm374_vm2 = vcmask (!%p251_p3), 1040384  }
   0x7   : > { %254 = sbr.rel (%p251_p3) target bundleno = 304 (0x130), region = 32 }
   0x8   : > { %v933_v1 = vshrl.u32 (!%p251_p3), %v364_v0, 7 }
   0xa   : > { %v952_v4 = vsub.s32 (!%p251_p3), 0, %v933_v1  ;;  %v955_v5 = vsub.s32 (!%p251_p3), 1, %v933_v1 }
   0xe   : > { %s1065_s18 = smov (!%p313_p4, %s871_s18), 1 }
   0xf   : > { %s805_s22 = sshll.u32 %s1065_s18, 1  ;;  %s809_s23 = sshll.u32 %s1065_s18, 3 }
  0x10   : > { %s339_s26 = scalar_lea.vmem %s1054_s2, %s805_s22  ;;  %s320_s29 = scalar_lea.vmem %s1052_s0, %s809_s23 }
  0x11   : > { %v943_v2 = vld [vmem:[%s339_s26] sm:$0x3]  ;;  %s330_s7 = scalar_lea.vmem %s1053_s1, %s809_s23  ;;  %s358_s10 = scalar_lea.vmem %s1057_s5, %s1065_s18 }
  0x12   : > { %v948_v3 = vld [vmem:[%s320_s29] sm:$0xff]  ;;  %vm360_vm1 = vcmp.ne.s32.totalorder %v943_v2, 4294967295  ;;  %v443_v50 = vrot.slane %v943_v2, %v952_v4  ;;  %v447_v51 = vrot.slane %v943_v2, %v955_v5  ;;  %s346_s14 = scalar_lea.vmem %s1055_s3, %s1065_s18  ;;  %s352_s22 = scalar_lea.vmem %s1056_s4, %s1065_s18 }
  0x13   : > { %v959_v6 = vcombine.high %v948_v3, %v948_v3  ;;  %v512_v7 = vld [vmem:[%s330_s7] sm:$0xff]  ;;  %v806_v9 = vsel %vm360_vm1, 1.0, %v881_v8  ;;  %v394_v13 = vsel %vm393_vm0, %v948_v3, -inf }
  0x14   : > { %v963_v10 = vcombine.high %v512_v7, %v512_v7  ;;  %v367_v11 = vrot.slane %v806_v9, %v952_v4  ;;  %v371_v12 = vrot.slane %v806_v9, %v955_v5  ;;  %v516_v18 = vsel %vm393_vm0, %v512_v7, -inf }
  0x15   : > { %v401_v14 = vsel %vm393_vm0, %v959_v6, -inf  ;;  %v395_v20 = vrot.slane %v394_v13, 4  ;;  %v517_v24 = vrot.slane %v516_v18, 4  ;;  %vm448_vm3 = vcmp.eq.s32.totalorder %v933_v1, %v443_v50 }
  0x16   : > { %v375_v15 = vsel %vm374_vm2, %v367_v11, 0.0  ;;  %v376_v16 = vsel %vm374_vm2, %v371_v12, 0.0  ;;  %v402_v17 = vrot.slane %v401_v14, 4  ;;  %v523_v21 = vsel %vm393_vm0, %v963_v10, -inf }
  0x17   : > { %v377_v19 = vadd.f32 %v376_v16, %v375_v15  ;;  %v524_v23 = vrot.slane %v523_v21, 4  ;;  %v518_v27 = vmax.f32 %v516_v18, %v517_v24  ;;  %v396_v28 = vmax.f32 %v394_v13, %v395_v20 }
  0x18   : > { %v403_v22 = vmax.f32 %v401_v14, %v402_v17  ;;  %vm995_vm4 = vcmp.eq.s32.totalorder %v933_v1, %v447_v51  ;;  %v560_v53 = vsel %vm448_vm3, %v512_v7, 0.0  ;;  %v450_v55 = vsel %vm448_vm3, %v948_v3, 0.0 }
  0x19   : > { %378 = vadd.xlane.f32.xlu0 %v377_v19  ;;  %v525_v26 = vmax.f32 %v523_v21, %v524_v23  ;;  %v519_v30 = vrot.slane %v518_v27, 2  ;;  %v397_v31 = vrot.slane %v396_v28, 2  ;;  %v451_v57 = vsel %vm995_vm4, %v959_v6, 0.0 }
  0x1a   : > { %v404_v25 = vrot.slane %v403_v22, 2  ;;  %v561_v58 = vsel %vm995_vm4, %v963_v10, 0.0  ;;  %v562_v61 = vsel %vm393_vm0, %v560_v53, 0.0  ;;  %v459_v12 = vsel %vm393_vm0, %v451_v57, 0.0 }
  0x1b   : > { %v526_v29 = vrot.slane %v525_v26, 2  ;;  %v520_v34 = vmax.f32 %v518_v27, %v519_v30  ;;  %v398_v35 = vmax.f32 %v396_v28, %v397_v31  ;;  %v569_v6 = vsel %vm393_vm0, %v561_v58, 0.0 }
  0x1c   : > { %v405_v32 = vmax.f32 %v403_v22, %v404_v25  ;;  %v563_v13 = vrot.slane %v562_v61, 4  ;;  %v570_v19 = vrot.slane %v569_v6, 4  ;;  %v460_v22 = vrot.slane %v459_v12, 4 }
  0x1d   : > { %v527_v33 = vmax.f32 %v525_v26, %v526_v29  ;;  %v521_v38 = vrot.slane %v520_v34, 1  ;;  %v399_v39 = vrot.slane %v398_v35, 1 }
  0x1e   : > { %v406_v36 = vrot.slane %v405_v32, 1  ;;  %v564_v25 = vadd.f32 %v563_v13, %v562_v61  ;;  %v571_v31 = vadd.f32 %v570_v19, %v569_v6 }
  0x1f   : > { %v528_v37 = vrot.slane %v527_v33, 1  ;;  %v980_v42 = vmax.f32 %v520_v34, %v521_v38  ;;  %v982_v43 = vmax.f32 %v398_v35, %v399_v39  ;;  %v461_v34 = vadd.f32 %v460_v22, %v459_v12 }
  0x20   : > { %v976_v40 = vmax.f32 %v405_v32, %v406_v36 }
  0x21   : > { %v978_v41 = vmax.f32 %v527_v33, %v528_v37  ;;  %v565_v37 = vrot.slane %v564_v25, 2 }
  0x22   : > { %v410_v45 = vcombine.low %v982_v43, %v976_v40 }
  0x23   : > { %v532_v44 = vcombine.low %v980_v42, %v978_v41 }
  0x24   : > { %v412_v47 = vsub.f32 %v948_v3, %v410_v45  ;;  %v452_v3 = vsel %vm393_vm0, %v450_v55, 0.0  ;;  %v882_v55 = vmov 1966171168  }
  0x25   : > { %v534_v46 = vsub.f32 %v512_v7, %v532_v44  ;;  %v453_v16 = vrot.slane %v452_v3, 4 }
  0x26   : > { %v413_v49 = vmul.f32 1.442695, %v412_v47 }
  0x27   : > { %v535_v48 = vmul.f32 1.442695, %v534_v46  ;;  %v454_v28 = vadd.f32 %v453_v16, %v452_v3  ;;  %v572_v46 = vrot.slane %v571_v31, 2 }
  0x29   : > { %845 = vpow2.f32 %v535_v48  ;;  %v455_v44 = vrot.slane %v454_v28, 2  ;;  %v462_v48 = vrot.slane %v461_v34, 2  ;;  %v573_v51 = vadd.f32 %v572_v46, %v571_v31 }
  0x2a   : > { %847 = vpow2.f32 %v413_v49  ;;  %v566_v49 = vadd.f32 %v565_v37, %v564_v25 }
  0x2b   : > { %v456_v50 = vadd.f32 %v455_v44, %v454_v28  ;;  %v463_v52 = vadd.f32 %v462_v48, %v461_v34  ;;  %v574_v57 = vrot.slane %v573_v51, 1 }
  0x2c   : > { %v567_v53 = vrot.slane %v566_v49, 1 }
  0x33   : > { %v846_v54 = vpop.eup %845 }
  0x34   : > { %v848_v56 = vpop.eup %847  ;;  %v538_v59 = vcombine.high %v846_v54, %v846_v54  ;;  %v540_v60 = vsel %vm393_vm0, %v846_v54, 0.0  ;;  %v457_v54 = vrot.slane %v456_v50, 1 }
  0x35   : > { %v541_v62 = vrot.slane %v540_v60, 4  ;;  %v416_v63 = vcombine.high %v848_v56, %v848_v56  ;;  %v418_v0 = vsel %vm393_vm0, %v848_v56, 0.0  ;;  %v472_v56 = vunpack.c.l.s4 %v882_v55 }
  0x36   : > { %v547_v7 = vsel %vm393_vm0, %v538_v59, 0.0  ;;  %v419_v8 = vrot.slane %v418_v0, 4  ;;  %v464_v59 = vrot.slane %v463_v52, 1  ;;  %v458_v3 = vadd.f32 %v457_v54, %v456_v50 }
  0x37   : > { %v542_v9 = vadd.f32 %v541_v62, %v540_v60  ;;  %v548_v11 = vrot.slane %v547_v7, 4  ;;  %v425_v10 = vsel %vm393_vm0, %v416_v63, 0.0  ;;  %v568_v62 = vadd.f32 %v567_v53, %v566_v49 }
  0x38   : > { %v420_v14 = vadd.f32 %v419_v8, %v418_v0  ;;  %v426_v15 = vrot.slane %v425_v10, 4  ;;  %v473_v8 = vunpack.c.0.s8 %v472_v56  ;;  %v465_v13 = vadd.f32 %v464_v59, %v463_v52 }
  0x39   : > { %v543_v17 = vrot.slane %v542_v9, 2  ;;  %v549_v18 = vadd.f32 %v548_v11, %v547_v7  ;;  %v575_v11 = vadd.f32 %v574_v57, %v573_v51 }
  0x3a   : > { %v421_v20 = vrot.slane %v420_v14, 2  ;;  %v427_v21 = vadd.f32 %v426_v15, %v425_v10 }
  0x3b   : > { %v544_v23 = vadd.f32 %v543_v17, %v542_v9  ;;  %v550_v24 = vrot.slane %v549_v18, 2 }
  0x3c   : > { %v422_v26 = vadd.f32 %v421_v20, %v420_v14  ;;  %v428_v27 = vrot.slane %v427_v21, 2 }
  0x3d   : > { %v545_v29 = vrot.slane %v544_v23, 1  ;;  %v551_v30 = vadd.f32 %v550_v24, %v549_v18  ;;  %v476_v18 = vsub.s32 %v473_v8, %v933_v1 }
  0x3e   : > { %v423_v32 = vrot.slane %v422_v26, 1  ;;  %v429_v33 = vadd.f32 %v428_v27, %v427_v21 }
  0x3f   : > { %v546_v35 = vadd.f32 %v545_v29, %v544_v23  ;;  %v552_v36 = vrot.slane %v551_v30, 1 }
  0x40   : > { %v424_v38 = vadd.f32 %v423_v32, %v422_v26  ;;  %v430_v39 = vrot.slane %v429_v33, 1 }
  0x41   : > { %v553_v45 = vadd.f32 %v552_v36, %v551_v30  ;;  %849 = vlog2.f32 %v546_v35 }
  0x42   : > { %v431_v47 = vadd.f32 %v430_v39, %v429_v33  ;;  %851 = vlog2.f32 %v424_v38 }
  0x43   : > { %853 = vlog2.f32 %v553_v45 }
  0x44   : > { %855 = vlog2.f32 %v431_v47 }
  0x4b   : > { %v850_v58 = vpop.eup %849 }
  0x4c   : > { %v852_v60 = vpop.eup %851  ;;  %v555_v61 = vmul.f32 0.6931472, %v850_v58 }
  0x4d   : > { %v854_v63 = vpop.eup %853  ;;  %v433_v0 = vmul.f32 0.6931472, %v852_v60 }
  0x4e   : > { %v856_v7 = vpop.eup %855  ;;  %v557_v6 = vmul.f32 0.6931472, %v854_v63  ;;  %v558_v9 = vadd.f32 %v555_v61, %v980_v42 }
  0x4f   : > { %v435_v10 = vmul.f32 0.6931472, %v856_v7  ;;  %v436_v12 = vadd.f32 %v433_v0, %v982_v43 }
  0x50   : > { %v559_v14 = vadd.f32 %v557_v6, %v978_v41  ;;  %v576_v15 = vsub.f32 %v558_v9, %v568_v62 }
  0x51   : > { %v437_v16 = vadd.f32 %v435_v10, %v976_v40  ;;  %v466_v17 = vsub.f32 %v436_v12, %v458_v3 }
  0x52   : > { %v577_v19 = vsub.f32 %v559_v14, %v575_v11 }
  0x53   : > { %v467_v20 = vsub.f32 %v437_v16, %v465_v13 }
  0x54   : > { %v580_v21 = vcombine.low %v576_v15, %v577_v19 }
  0x55   : > { %v470_v22 = vcombine.low %v466_v17, %v467_v20 }
  0x56   : > { %v587_v23 = vrot.slane %v580_v21, %v476_v18 }
  0x57   : > { %v477_v24 = vrot.slane %v470_v22, %v476_v18 }
  0x58   : > { %v594_v42 = vrot.slane %v587_v23, %v476_v18 }
  0x59   : > { %v484_v25 = vrot.slane %v477_v24, %v476_v18 }
  0x5a   : > { %v596_v43 = vsel %vm360_vm1, %v594_v42, 0.0 }
  0x5b   : > { %v601_v26 = vrot.slane %v596_v43, %v952_v4  ;;  %v605_v41 = vrot.slane %v596_v43, %v955_v5  ;;  %v486_v40 = vsel %vm360_vm1, %v484_v25, 0.0 }
  0x5c   : > { %v491_v1 = vrot.slane %v486_v40, %v952_v4  ;;  %v495_v27 = vrot.slane %v486_v40, %v955_v5 }
  0x5d   : > { %v608_v28 = vsel %vm374_vm2, %v601_v26, 0.0  ;;  %v609_v29 = vsel %vm374_vm2, %v605_v41, 0.0 }
  0x5e   : > { %v610_v30 = vadd.f32 %v609_v29, %v608_v28  ;;  %v498_v31 = vsel %vm374_vm2, %v491_v1, 0.0  ;;  %v499_v32 = vsel %vm374_vm2, %v495_v27, 0.0 }
  0x5f   : > { %v500_v33 = vadd.f32 %v499_v32, %v498_v31 }
  0x60   : > { %611 = vadd.xlane.f32.xlu1 %v610_v30 }
  0x61   : > { %501 = vadd.xlane.f32.xlu0 %v500_v33 }
  0xa6   : > { %v379_v34 = vpop.xlane.xlu0 %378 }
  0xa7   : > { %v380_v2 = vrot.slane %v379_v34, 4 }
  0xa9   : > { %v381_v35 = vadd.f32 %v380_v2, %v379_v34 }
  0xab   : > { %v382_v36 = vrot.slane %v381_v35, 2 }
  0xad   : > { %v383_v4 = vadd.f32 %v382_v36, %v381_v35 }
  0xaf   : > { %v384_v37 = vrot.slane %v383_v4, 1 }
  0xb1   : > { %v385_v5 = vadd.f32 %v384_v37, %v383_v4 }
  0xb3   : > { %811 = vpush %v385_v5 }
  0xe4   : > { %s812_s11 = spop %811 }
  0xe5   : > { %v387_v38 = vstv %s812_s11 }
  0xe6   : > { %388 = vst [vmem:[%s358_s10] sm:$0x1] %v387_v38 }
  0xed   : > { %v612_v39 = vpop.xlane.xlu1 %611 }
  0xee   : > { %v613_v44 = vrot.slane %v612_v39, 4  ;;  %v502_v45 = vpop.xlane.xlu0 %501 }
  0xef   : > { %v503_v46 = vrot.slane %v502_v45, 4 }
  0xf0   : > { %v614_v47 = vadd.f32 %v613_v44, %v612_v39 }
  0xf1   : > { %v504_v48 = vadd.f32 %v503_v46, %v502_v45 }
  0xf2   : > { %v615_v49 = vrot.slane %v614_v47, 2 }
  0xf3   : > { %v505_v50 = vrot.slane %v504_v48, 2 }
  0xf4   : > { %v616_v51 = vadd.f32 %v615_v49, %v614_v47 }
  0xf5   : > { %v506_v52 = vadd.f32 %v505_v50, %v504_v48 }
  0xf6   : > { %v617_v53 = vrot.slane %v616_v51, 1 }
  0xf7   : > { %v507_v54 = vrot.slane %v506_v52, 1 }
  0xf8   : > { %v618_v55 = vadd.f32 %v617_v53, %v616_v51 }
  0xf9   : > { %v508_v56 = vadd.f32 %v507_v54, %v506_v52 }
  0xfb   : > { %813 = vpush %v508_v56 }
  0xfc   : > { %815 = vpush %v618_v55 }
 0x12c   : > { %s814_s15 = spop %813 }
 0x12d   : > { %v510_v57 = vstv %s814_s15  ;;  %s816_s23 = spop %815 }
 0x12e   : > { %511 = vst [vmem:[%s346_s14] sm:$0x1] %v510_v57  ;;  %v620_v58 = vstv %s816_s23 }
 0x12f   : > { %621 = vst [vmem:[%s352_s22] sm:$0x1] %v620_v58 }
 0x130 PF: > { %s16_s20 = sadd.s32 1, %s879_s20   ;;  %s1060_s18 = smov %s875_s19 }
 0x131   : > { %p13_p5 = scmp.ge.s32.totalorder %s16_s20, 4   ;;  %s1061_s19 = smov %s1063_s21 }
 0x133   :  { %15 = sbr.rel (!%p13_p5) target bundleno = 2 (0x2), region = 92 }

</bundles_post_ra>
